<compile_context>
chip_gen: v7x
topology: tpu7x:2x2x1
jax: 0.10.0
libtpu: 0.0.40
codegen_flags: <defaults>
</compile_context>

<pallas_src>
import functools
import math

import jax
import jax.numpy as jnp
from jax.experimental import pallas as pl
from jax.experimental.pallas import tpu as pltpu


def _layernorm_f32(x, gamma, beta, eps=1e-5):
    # x: (T, E) f32, gamma/beta: (1, E) f32
    mu = jnp.mean(x, axis=-1, keepdims=True)
    xc = x - mu
    var = jnp.mean(xc * xc, axis=-1, keepdims=True)
    return xc * jax.lax.rsqrt(var + eps) * gamma + beta


def _gelu_exact(x):
    # nn.GELU() default: exact erf formulation (keep f32 on the VPU; v5e has no bf16 VPU).
    return 0.5 * x * (1.0 + jax.lax.erf(x * (1.0 / math.sqrt(2.0))))


# dot_general dimension numbers (2-D operands, no in-kernel weight transposes)
_NN = (((1,), (0,)), ((), ()))  # A @ B
_NT = (((1,), (1,)), ((), ()))  # A @ B.T  (contract last dim of both)


def transformer_block_kernel(
    xq_ref,    # (1, TQ, E) f32   query / residual rows for this tile
    xkv_ref,   # (1, S,  E) bf16  full sequence (source of K, V)
    wq_ref,    # (E, E)   bf16  Q projection, [in, out]
    bq_ref,    # (1, E)   f32
    wkv_ref,   # (E, 2E)  bf16  fused K|V projection, [in, out]
    bkv_ref,   # (1, 2E)  f32
    wo_ref,    # (E, E)   bf16  out_proj.weight.T
    bo_ref,    # (1, E)   f32
    w1_ref,    # (E, 4E)  bf16  ff linear1 weight (pre-transposed)
    b1_ref,    # (1, 4E)  f32
    w2_ref,    # (4E, E)  bf16  ff linear2 weight (pre-transposed)
    b2_ref,    # (1, E)   f32
    g1_ref,    # (1, E)   f32  ln1 weight
    be1_ref,   # (1, E)   f32  ln1 bias
    g2_ref,    # (1, E)   f32  ln2 weight
    be2_ref,   # (1, E)   f32  ln2 bias
    o_ref,     # (1, TQ, E)
    kv_ref,    # (S, 2E)  bf16  VMEM scratch: per-batch [K | V] cache
    *,
    n_head,
    ffn_chunk,
):
    f32 = jnp.float32
    bf16 = jnp.bfloat16
    _, TQ, E = xq_ref.shape
    S = xkv_ref.shape[1]
    Dh = E // n_head
    scale = 1.0 / math.sqrt(Dh)

    # ---- K/V projection cache: computed once per batch element (qi == 0).  The qi grid
    #      axis is "arbitrary" (sequential) and qi==0 happens exactly when b changes, so
    #      the cache can never be stale.  One lane-dense (S,E)@(E,2E) matmul for all heads.
    @pl.when(pl.program_id(1) == 0)
    def _():
        kv = jax.lax.dot_general(xkv_ref[0], wkv_ref[...], _NN,
                                 preferred_element_type=f32) + bkv_ref[...]
        kv_ref[...] = kv.astype(bf16)                      # (S, 2E): [K | V]

    x_q = xq_ref[0]                                        # (TQ, E) f32 (exact residual path)

    # ---- Fused Q projection: one lane-dense (TQ,E)@(E,E) matmul for all heads. ----
    q = jax.lax.dot_general(x_q.astype(bf16), wq_ref[...], _NN,
                            preferred_element_type=f32) + bq_ref[...]
    q_b = q.astype(bf16)                                   # (TQ, E)

    kv_all = kv_ref[...]                                   # (S, 2E) bf16
    k_all, v_all = kv_all[:, :E], kv_all[:, E:]            # (S, E) each

    # ---- Per-head scores / softmax / PV (heads are contiguous Dh-lane slices). ----
    outs = []
    for h in range(n_head):
        lo = h * Dh
        qh = q_b[:, lo:lo + Dh]                            # (TQ, Dh) bf16
        kh = k_all[:, lo:lo + Dh]                          # (S,  Dh) bf16
        vh = v_all[:, lo:lo + Dh]                          # (S,  Dh) bf16

        s = jax.lax.dot_general(qh, kh, _NT, preferred_element_type=f32) * scale   # (TQ, S)
        s = s - jnp.max(s, axis=-1, keepdims=True)
        p = jnp.exp(s)
        p = p * pl.reciprocal(jnp.sum(p, axis=-1, keepdims=True), approx=True)

        outs.append(jax.lax.dot_general(p.astype(bf16), vh, _NN,
                                        preferred_element_type=f32))                # (TQ, Dh)

    # Cheap lane concat, then ONE lane-dense (TQ,E)@(E,E) output projection.
    o_heads = jnp.concatenate(outs, axis=-1).astype(bf16)  # (TQ, E)
    attn = jax.lax.dot_general(o_heads, wo_ref[...], _NN,
                               preferred_element_type=f32) + bo_ref[...]

    # residual + ln1  (dropout = identity in eval)
    h1 = _layernorm_f32(x_q + attn, g1_ref[...], be1_ref[...])
    h1_b = h1.astype(bf16)

    # ---- Feed-forward, chunked over the 4E dim (bounds the f32 intermediate). ----
    F = w1_ref.shape[1]
    ff = jnp.zeros((TQ, E), f32)
    for c0 in range(0, F, ffn_chunk):
        w = min(ffn_chunk, F - c0)
        f_c = jax.lax.dot_general(h1_b, w1_ref[:, c0:c0 + w], _NN,
                                  preferred_element_type=f32) + b1_ref[:, c0:c0 + w]
        f_c = _gelu_exact(f_c)                              # exact erf, matches nn.GELU()
        ff = ff + jax.lax.dot_general(f_c.astype(bf16), w2_ref[c0:c0 + w, :], _NN,
                                      preferred_element_type=f32)
    ff = ff + b2_ref[...]

    # residual + ln2
    h2 = _layernorm_f32(h1 + ff, g2_ref[...], be2_ref[...])
    o_ref[0] = h2.astype(o_ref.dtype)


def _prep_weights(params, wdtype=jnp.bfloat16):
    """One-time HBM-side repack: transpose to [in, out], fuse K|V columns, cast matmul
    weights to bf16 (biases / LN params stay f32)."""
    E = params["w_out"].shape[0]
    f32 = jnp.float32
    w_in = params["w_in"]          # (3E, E) torch layout [out, in]; rows = [Q; K; V]
    b_in = params["b_in"][0]       # (3E,)
    return dict(
        wq=w_in[:E].T.astype(wdtype),                                                   # (E, E)
        bq=b_in[:E].reshape(1, E).astype(f32),
        wkv=jnp.concatenate([w_in[E:2 * E].T, w_in[2 * E:].T], axis=1).astype(wdtype),  # (E, 2E)
        bkv=b_in[E:].reshape(1, 2 * E).astype(f32),
        wo=params["w_out"].T.astype(wdtype),                                            # (E, E)
        bo=params["b_out"].astype(f32),                                                 # (1, E)
        w1=params["w1"].T.astype(wdtype), b1=params["b1"].astype(f32),
        w2=params["w2"].T.astype(wdtype), b2=params["b2"].astype(f32),
        g1=params["g1"].astype(f32), be1=params["be1"].astype(f32),
        g2=params["g2"].astype(f32), be2=params["be2"].astype(f32),
    )


def _vmem_capacity_bytes():
    try:
        return int(pltpu.get_tpu_info().vmem_capacity_bytes)
    except Exception:
        return 128 * 1024 * 1024


@functools.partial(jax.jit, static_argnames=("n_head", "q_tile"))
def transformer_block(x, params, n_head, q_tile=None):
    """x: (B, S, E) float32. params: dict of weights (PyTorch layouts)."""
    B, S, E = x.shape
    vmem_cap = _vmem_capacity_bytes()
    small_vmem = vmem_cap <= 64 * 1024 * 1024        # v7x-class (64 MiB physical VMEM)
    if q_tile is None:
        q_tile = 128 if small_vmem else 256
    TQ = min(S, q_tile)
    assert S % TQ == 0, "sequence length must be a multiple of the query tile"
    n_q = S // TQ
    ffn_chunk = min(4 * E, 1024)

    p = _prep_weights(params)
    w_args = (p["wq"], p["bq"], p["wkv"], p["bkv"], p["wo"], p["bo"],
              p["w1"], p["b1"], p["w2"], p["b2"],
              p["g1"], p["be1"], p["g2"], p["be2"])

    x_kv = x.astype(jnp.bfloat16)   # bf16 stream for the K/V source (halves the big DMA)

    def whole(a):
        # Full-array block, constant index map: weight fetched once, stays resident.
        # TODO(synk): request single-buffering (pl.Buffered(1)) once verified on this Mosaic.
        nd = a.ndim
        return pl.BlockSpec(a.shape, lambda b, qi, _nd=nd: (0,) * _nd)

    kernel = functools.partial(transformer_block_kernel, n_head=n_head, ffn_chunk=ffn_chunk)

    # Advisory cost estimate: proj (Q + KV + out = 4E^2/token) + FFN (8E^2/token) + attention.
    flops = int(2 * B * S * E * E * 12 + 4 * B * S * S * E)
    transcendentals = int(B * n_head * S * S + 4 * B * S * E)
    bytes_accessed = int(B * S * E * (4 + 2 + 4) + 24 * E * E)

    return pl.pallas_call(
        kernel,
        out_shape=jax.ShapeDtypeStruct((B, S, E), x.dtype),
        grid_spec=pltpu.PrefetchScalarGridSpec(
            num_scalar_prefetch=0,
            grid=(B, n_q),
            in_specs=[
                pl.BlockSpec((1, TQ, E), lambda b, qi: (b, qi, 0)),  # f32 query/residual tile
                pl.BlockSpec((1, S, E), lambda b, qi: (b, 0, 0)),    # bf16 full seq (K/V src)
            ] + [whole(a) for a in w_args],
            out_specs=pl.BlockSpec((1, TQ, E), lambda b, qi: (b, qi, 0)),
            scratch_shapes=[pltpu.VMEM((S, 2 * E), jnp.bfloat16)],   # per-batch [K | V] cache
        ),
        compiler_params=pltpu.CompilerParams(
            # b is independent ("parallel", feeds both TCs on v7x); qi must be sequential
            # ("arbitrary") so the qi==0 K/V-cache recompute guard is valid.
            dimension_semantics=("parallel", "arbitrary"),
            vmem_limit_bytes=(40 if small_vmem else 48) * 1024 * 1024,
        ),
        cost_estimate=pl.CostEstimate(flops=flops, transcendentals=transcendentals,
                                      bytes_accessed=bytes_accessed),
    )(x, x_kv, *w_args)


def reference_block(x, p, n_head):
    """Pure-JAX f32 reference with PyTorch-equivalent math (for verification)."""
    B, S, E = x.shape
    Dh = E // n_head
    qkv = jnp.einsum("bse,fe->bsf", x, p["w_in"]) + p["b_in"][0]
    q, k, v = qkv[..., :E], qkv[..., E:2 * E], qkv[..., 2 * E:]

    def split_heads(t):  # (B,S,E) -> (B,H,S,Dh)
        return t.reshape(B, S, n_head, Dh).transpose(0, 2, 1, 3)

    qh, kh, vh = split_heads(q), split_heads(k), split_heads(v)
    s = jnp.einsum("bhqd,bhkd->bhqk", qh, kh) / math.sqrt(Dh)
    pattn = jax.nn.softmax(s, axis=-1)
    o = jnp.einsum("bhqk,bhkd->bhqd", pattn, vh).transpose(0, 2, 1, 3).reshape(B, S, E)
    attn = jnp.einsum("bse,fe->bsf", o, p["w_out"]) + p["b_out"][0]

    def ln(t, g, b, eps=1e-5):
        mu = jnp.mean(t, axis=-1, keepdims=True)
        var = jnp.mean((t - mu) ** 2, axis=-1, keepdims=True)
        return (t - mu) * jax.lax.rsqrt(var + eps) * g[0] + b[0]

    h1 = ln(x + attn, p["g1"], p["be1"])
    f = jnp.einsum("bse,fe->bsf", h1, p["w1"]) + p["b1"][0]
    f = 0.5 * f * (1.0 + jax.lax.erf(f / math.sqrt(2.0)))
    f = jnp.einsum("bsf,ef->bse", f, p["w2"]) + p["b2"][0]
    return ln(h1 + f, p["g2"], p["be2"])


def init_params(key, n_embd):
    E = n_embd
    ks = jax.random.split(key, 8)
    sc = 0.1
    return {
        "w_in":  sc * jax.random.normal(ks[0], (3 * E, E), jnp.float32),
        "b_in":  sc * jax.random.normal(ks[1], (1, 3 * E), jnp.float32),
        "w_out": sc * jax.random.normal(ks[2], (E, E), jnp.float32),
        "b_out": sc * jax.random.normal(ks[3], (1, E), jnp.float32),
        "w1":    sc * jax.random.normal(ks[4], (4 * E, E), jnp.float32),
        "b1":    sc * jax.random.normal(ks[5], (1, 4 * E), jnp.float32),
        "w2":    sc * jax.random.normal(ks[6], (E, 4 * E), jnp.float32),
        "b2":    sc * jax.random.normal(ks[7], (1, E), jnp.float32),
        "g1":    jnp.ones((1, E), jnp.float32),
        "be1":   jnp.zeros((1, E), jnp.float32),
        "g2":    jnp.ones((1, E), jnp.float32),
        "be2":   jnp.zeros((1, E), jnp.float32),
    }


if __name__ == "__main__":
    B, S, E, H = 2, 8, 32, 4

    key = jax.random.PRNGKey(0)
    kx, kp = jax.random.split(key)
    x = jax.random.normal(kx, (B, S, E), jnp.float32)
    params = init_params(kp, E)

    out = jax.block_until_ready(transformer_block(x, params, n_head=H))
    ref = jax.block_until_ready(reference_block(x, params, H))

    assert out.shape == (B, S, E)
    # bf16 matmul operands + approx reciprocal vs. pure-f32 reference -> looser tolerance.
    err = float(jnp.max(jnp.abs(out.astype(jnp.float32) - ref)))
    assert err < 5e-2, err

    print("KERNEL_OK")
</pallas_src>

<mosaic_0001>
module attributes {stable_mosaic.version = 11 : i64} {
  func.func @transformer_block_kernel(%arg0: i32, %arg1: i32, %arg2: memref<1x8x32xf32, #tpu.memory_space<vmem>>, %arg3: memref<1x8x32xbf16, #tpu.memory_space<vmem>>, %arg4: memref<32x32xbf16, #tpu.memory_space<vmem>>, %arg5: memref<1x32xf32, #tpu.memory_space<vmem>>, %arg6: memref<32x64xbf16, #tpu.memory_space<vmem>>, %arg7: memref<1x64xf32, #tpu.memory_space<vmem>>, %arg8: memref<32x32xbf16, #tpu.memory_space<vmem>>, %arg9: memref<1x32xf32, #tpu.memory_space<vmem>>, %arg10: memref<32x128xbf16, #tpu.memory_space<vmem>>, %arg11: memref<1x128xf32, #tpu.memory_space<vmem>>, %arg12: memref<128x32xbf16, #tpu.memory_space<vmem>>, %arg13: memref<1x32xf32, #tpu.memory_space<vmem>>, %arg14: memref<1x32xf32, #tpu.memory_space<vmem>>, %arg15: memref<1x32xf32, #tpu.memory_space<vmem>>, %arg16: memref<1x32xf32, #tpu.memory_space<vmem>>, %arg17: memref<1x32xf32, #tpu.memory_space<vmem>>, %arg18: memref<1x8x32xf32, #tpu.memory_space<vmem>>, %arg19: memref<8x64xbf16, #tpu.memory_space<vmem>>) attributes {dimension_semantics = [#tpu.dimension_semantics<parallel>, #tpu.dimension_semantics<arbitrary>], iteration_bounds = array<i64: 2, 1>, scalar_prefetch = 0 : i64, scratch_operands = 1 : i64, tpu.core_type = #tpu.core_type<tc>, window_params = [{transform_indices = @transform_0, window_bounds = array<i64: 1, 8, 32>}, {transform_indices = @transform_1, window_bounds = array<i64: 1, 8, 32>}, {pipeline_mode = #tpu.pipeline_mode<synchronous>, transform_indices = @transform_2, window_bounds = array<i64: 32, 32>}, {pipeline_mode = #tpu.pipeline_mode<synchronous>, transform_indices = @transform_3, window_bounds = array<i64: 1, 32>}, {pipeline_mode = #tpu.pipeline_mode<synchronous>, transform_indices = @transform_4, window_bounds = array<i64: 32, 64>}, {pipeline_mode = #tpu.pipeline_mode<synchronous>, transform_indices = @transform_5, window_bounds = array<i64: 1, 64>}, {pipeline_mode = #tpu.pipeline_mode<synchronous>, transform_indices = @transform_6, window_bounds = array<i64: 32, 32>}, {pipeline_mode = #tpu.pipeline_mode<synchronous>, transform_indices = @transform_7, window_bounds = array<i64: 1, 32>}, {pipeline_mode = #tpu.pipeline_mode<synchronous>, transform_indices = @transform_8, window_bounds = array<i64: 32, 128>}, {pipeline_mode = #tpu.pipeline_mode<synchronous>, transform_indices = @transform_9, window_bounds = array<i64: 1, 128>}, {pipeline_mode = #tpu.pipeline_mode<synchronous>, transform_indices = @transform_10, window_bounds = array<i64: 128, 32>}, {pipeline_mode = #tpu.pipeline_mode<synchronous>, transform_indices = @transform_11, window_bounds = array<i64: 1, 32>}, {pipeline_mode = #tpu.pipeline_mode<synchronous>, transform_indices = @transform_12, window_bounds = array<i64: 1, 32>}, {pipeline_mode = #tpu.pipeline_mode<synchronous>, transform_indices = @transform_13, window_bounds = array<i64: 1, 32>}, {pipeline_mode = #tpu.pipeline_mode<synchronous>, transform_indices = @transform_14, window_bounds = array<i64: 1, 32>}, {pipeline_mode = #tpu.pipeline_mode<synchronous>, transform_indices = @transform_15, window_bounds = array<i64: 1, 32>}, {transform_indices = @transform_16, window_bounds = array<i64: 1, 8, 32>}]} {
    %c0_i32 = arith.constant 0 : i32
    %0 = arith.cmpi eq, %arg1, %c0_i32 : i32
    %1 = arith.extui %0 : i1 to i32
    %c0_i32_0 = arith.constant 0 : i32
    %2 = arith.cmpi ne, %1, %c0_i32_0 : i32
    scf.if %2 {
      %c0_69 = arith.constant 0 : index
      %c0_70 = arith.constant 0 : index
      %c0_71 = arith.constant 0 : index
      %165 = vector.load %arg3[%c0_69, %c0_70, %c0_71] : memref<1x8x32xbf16, #tpu.memory_space<vmem>>, vector<1x8x32xbf16>
      %166 = vector.shape_cast %165 : vector<1x8x32xbf16> to vector<8x32xbf16>
      %c0_72 = arith.constant 0 : index
      %c0_73 = arith.constant 0 : index
      %167 = vector.load %arg6[%c0_72, %c0_73] : memref<32x64xbf16, #tpu.memory_space<vmem>>, vector<32x64xbf16>
      %cst_74 = arith.constant dense<0.000000e+00> : vector<8x64xf32>
      %168 = tpu.matmul %166, %167, %cst_74 {dimension_numbers = #tpu.dot_dimension_numbers<[1], [0], [0], [1], [0, 0, 1, 1], [], []>} : vector<8x32xbf16>, vector<32x64xbf16>, vector<8x64xf32> -> vector<8x64xf32>
      %c0_75 = arith.constant 0 : index
      %c0_76 = arith.constant 0 : index
      %169 = vector.load %arg7[%c0_75, %c0_76] : memref<1x64xf32, #tpu.memory_space<vmem>>, vector<1x64xf32>
      %170 = vector.broadcast %169 : vector<1x64xf32> to vector<8x64xf32>
      %171 = arith.addf %168, %170 : vector<8x64xf32>
      %172 = arith.truncf %171 : vector<8x64xf32> to vector<8x64xbf16>
      %c0_77 = arith.constant 0 : index
      %c0_78 = arith.constant 0 : index
      %173 = vector.load %arg19[%c0_77, %c0_78] : memref<8x64xbf16, #tpu.memory_space<vmem>>, vector<8x64xbf16>
      tpu.vector_store %arg19[%c0_77, %c0_78], %172 {strides = array<i32>} : memref<8x64xbf16, #tpu.memory_space<vmem>>, vector<8x64xbf16>,
    } else {
    }
    %c0 = arith.constant 0 : index
    %c0_1 = arith.constant 0 : index
    %c0_2 = arith.constant 0 : index
    %3 = vector.load %arg2[%c0, %c0_1, %c0_2] : memref<1x8x32xf32, #tpu.memory_space<vmem>>, vector<1x8x32xf32>
    %4 = vector.shape_cast %3 : vector<1x8x32xf32> to vector<8x32xf32>
    %5 = arith.truncf %4 : vector<8x32xf32> to vector<8x32xbf16>
    %c0_3 = arith.constant 0 : index
    %c0_4 = arith.constant 0 : index
    %6 = vector.load %arg4[%c0_3, %c0_4] : memref<32x32xbf16, #tpu.memory_space<vmem>>, vector<32x32xbf16>
    %cst = arith.constant dense<0.000000e+00> : vector<8x32xf32>
    %7 = tpu.matmul %5, %6, %cst {dimension_numbers = #tpu.dot_dimension_numbers<[1], [0], [0], [1], [0, 0, 1, 1], [], []>} : vector<8x32xbf16>, vector<32x32xbf16>, vector<8x32xf32> -> vector<8x32xf32>
    %c0_5 = arith.constant 0 : index
    %c0_6 = arith.constant 0 : index
    %8 = vector.load %arg5[%c0_5, %c0_6] : memref<1x32xf32, #tpu.memory_space<vmem>>, vector<1x32xf32>
    %9 = vector.broadcast %8 : vector<1x32xf32> to vector<8x32xf32>
    %10 = arith.addf %7, %9 : vector<8x32xf32>
    %11 = arith.truncf %10 : vector<8x32xf32> to vector<8x32xbf16>
    %c0_7 = arith.constant 0 : index
    %c0_8 = arith.constant 0 : index
    %12 = vector.load %arg19[%c0_7, %c0_8] : memref<8x64xbf16, #tpu.memory_space<vmem>>, vector<8x64xbf16>
    %13 = vector.extract_strided_slice %12 {offsets = [0, 0], sizes = [8, 32], strides = [1, 1]} : vector<8x64xbf16> to vector<8x32xbf16>
    %14 = vector.extract_strided_slice %12 {offsets = [0, 32], sizes = [8, 32], strides = [1, 1]} : vector<8x64xbf16> to vector<8x32xbf16>
    %15 = vector.extract_strided_slice %11 {offsets = [0, 0], sizes = [8, 8], strides = [1, 1]} : vector<8x32xbf16> to vector<8x8xbf16>
    %16 = vector.extract_strided_slice %13 {offsets = [0, 0], sizes = [8, 8], strides = [1, 1]} : vector<8x32xbf16> to vector<8x8xbf16>
    %17 = vector.extract_strided_slice %14 {offsets = [0, 0], sizes = [8, 8], strides = [1, 1]} : vector<8x32xbf16> to vector<8x8xbf16>
    %cst_9 = arith.constant dense<0.000000e+00> : vector<8x8xf32>
    %18 = tpu.matmul %15, %16, %cst_9 {dimension_numbers = #tpu.dot_dimension_numbers<[1], [1], [0], [0], [0, 0, 1, 0], [], []>} : vector<8x8xbf16>, vector<8x8xbf16>, vector<8x8xf32> -> vector<8x8xf32>
    %cst_10 = arith.constant 0.353553385 : f32
    %19 = vector.broadcast %cst_10 : f32 to vector<8x8xf32>
    %20 = arith.mulf %18, %19 : vector<8x8xf32>
    %cst_11 = arith.constant dense<0xFF800000> : vector<8xf32>
    %21 = vector.multi_reduction <maximumf>, %20, %cst_11 [1] : vector<8x8xf32> to vector<8xf32>
    %22 = vector.shape_cast %21 : vector<8xf32> to vector<8x1xf32>
    %23 = vector.broadcast %22 : vector<8x1xf32> to vector<8x8xf32>
    %24 = arith.subf %20, %23 : vector<8x8xf32>
    %25 = math.exp %24 : vector<8x8xf32>
    %cst_12 = arith.constant dense<0.000000e+00> : vector<8xf32>
    %26 = vector.multi_reduction <add>, %25, %cst_12 [1] : vector<8x8xf32> to vector<8xf32>
    %27 = vector.shape_cast %26 : vector<8xf32> to vector<8x1xf32>
    %28 = tpu.reciprocal %27 {approx = true} : vector<8x1xf32> -> vector<8x1xf32>
    %29 = vector.broadcast %28 : vector<8x1xf32> to vector<8x8xf32>
    %30 = arith.mulf %25, %29 : vector<8x8xf32>
    %31 = arith.truncf %30 : vector<8x8xf32> to vector<8x8xbf16>
    %cst_13 = arith.constant dense<0.000000e+00> : vector<8x8xf32>
    %32 = tpu.matmul %31, %17, %cst_13 {dimension_numbers = #tpu.dot_dimension_numbers<[1], [0], [0], [1], [0, 0, 1, 1], [], []>} : vector<8x8xbf16>, vector<8x8xbf16>, vector<8x8xf32> -> vector<8x8xf32>
    %33 = vector.extract_strided_slice %11 {offsets = [0, 8], sizes = [8, 8], strides = [1, 1]} : vector<8x32xbf16> to vector<8x8xbf16>
    %34 = vector.extract_strided_slice %13 {offsets = [0, 8], sizes = [8, 8], strides = [1, 1]} : vector<8x32xbf16> to vector<8x8xbf16>
    %35 = vector.extract_strided_slice %14 {offsets = [0, 8], sizes = [8, 8], strides = [1, 1]} : vector<8x32xbf16> to vector<8x8xbf16>
    %cst_14 = arith.constant dense<0.000000e+00> : vector<8x8xf32>
    %36 = tpu.matmul %33, %34, %cst_14 {dimension_numbers = #tpu.dot_dimension_numbers<[1], [1], [0], [0], [0, 0, 1, 0], [], []>} : vector<8x8xbf16>, vector<8x8xbf16>, vector<8x8xf32> -> vector<8x8xf32>
    %cst_15 = arith.constant 0.353553385 : f32
    %37 = vector.broadcast %cst_15 : f32 to vector<8x8xf32>
    %38 = arith.mulf %36, %37 : vector<8x8xf32>
    %cst_16 = arith.constant dense<0xFF800000> : vector<8xf32>
    %39 = vector.multi_reduction <maximumf>, %38, %cst_16 [1] : vector<8x8xf32> to vector<8xf32>
    %40 = vector.shape_cast %39 : vector<8xf32> to vector<8x1xf32>
    %41 = vector.broadcast %40 : vector<8x1xf32> to vector<8x8xf32>
    %42 = arith.subf %38, %41 : vector<8x8xf32>
    %43 = math.exp %42 : vector<8x8xf32>
    %cst_17 = arith.constant dense<0.000000e+00> : vector<8xf32>
    %44 = vector.multi_reduction <add>, %43, %cst_17 [1] : vector<8x8xf32> to vector<8xf32>
    %45 = vector.shape_cast %44 : vector<8xf32> to vector<8x1xf32>
    %46 = tpu.reciprocal %45 {approx = true} : vector<8x1xf32> -> vector<8x1xf32>
    %47 = vector.broadcast %46 : vector<8x1xf32> to vector<8x8xf32>
    %48 = arith.mulf %43, %47 : vector<8x8xf32>
    %49 = arith.truncf %48 : vector<8x8xf32> to vector<8x8xbf16>
    %cst_18 = arith.constant dense<0.000000e+00> : vector<8x8xf32>
    %50 = tpu.matmul %49, %35, %cst_18 {dimension_numbers = #tpu.dot_dimension_numbers<[1], [0], [0], [1], [0, 0, 1, 1], [], []>} : vector<8x8xbf16>, vector<8x8xbf16>, vector<8x8xf32> -> vector<8x8xf32>
    %51 = vector.extract_strided_slice %11 {offsets = [0, 16], sizes = [8, 8], strides = [1, 1]} : vector<8x32xbf16> to vector<8x8xbf16>
    %52 = vector.extract_strided_slice %13 {offsets = [0, 16], sizes = [8, 8], strides = [1, 1]} : vector<8x32xbf16> to vector<8x8xbf16>
    %53 = vector.extract_strided_slice %14 {offsets = [0, 16], sizes = [8, 8], strides = [1, 1]} : vector<8x32xbf16> to vector<8x8xbf16>
    %cst_19 = arith.constant dense<0.000000e+00> : vector<8x8xf32>
    %54 = tpu.matmul %51, %52, %cst_19 {dimension_numbers = #tpu.dot_dimension_numbers<[1], [1], [0], [0], [0, 0, 1, 0], [], []>} : vector<8x8xbf16>, vector<8x8xbf16>, vector<8x8xf32> -> vector<8x8xf32>
    %cst_20 = arith.constant 0.353553385 : f32
    %55 = vector.broadcast %cst_20 : f32 to vector<8x8xf32>
    %56 = arith.mulf %54, %55 : vector<8x8xf32>
    %cst_21 = arith.constant dense<0xFF800000> : vector<8xf32>
    %57 = vector.multi_reduction <maximumf>, %56, %cst_21 [1] : vector<8x8xf32> to vector<8xf32>
    %58 = vector.shape_cast %57 : vector<8xf32> to vector<8x1xf32>
    %59 = vector.broadcast %58 : vector<8x1xf32> to vector<8x8xf32>
    %60 = arith.subf %56, %59 : vector<8x8xf32>
    %61 = math.exp %60 : vector<8x8xf32>
    %cst_22 = arith.constant dense<0.000000e+00> : vector<8xf32>
    %62 = vector.multi_reduction <add>, %61, %cst_22 [1] : vector<8x8xf32> to vector<8xf32>
    %63 = vector.shape_cast %62 : vector<8xf32> to vector<8x1xf32>
    %64 = tpu.reciprocal %63 {approx = true} : vector<8x1xf32> -> vector<8x1xf32>
    %65 = vector.broadcast %64 : vector<8x1xf32> to vector<8x8xf32>
    %66 = arith.mulf %61, %65 : vector<8x8xf32>
    %67 = arith.truncf %66 : vector<8x8xf32> to vector<8x8xbf16>
    %cst_23 = arith.constant dense<0.000000e+00> : vector<8x8xf32>
    %68 = tpu.matmul %67, %53, %cst_23 {dimension_numbers = #tpu.dot_dimension_numbers<[1], [0], [0], [1], [0, 0, 1, 1], [], []>} : vector<8x8xbf16>, vector<8x8xbf16>, vector<8x8xf32> -> vector<8x8xf32>
    %69 = vector.extract_strided_slice %11 {offsets = [0, 24], sizes = [8, 8], strides = [1, 1]} : vector<8x32xbf16> to vector<8x8xbf16>
    %70 = vector.extract_strided_slice %13 {offsets = [0, 24], sizes = [8, 8], strides = [1, 1]} : vector<8x32xbf16> to vector<8x8xbf16>
    %71 = vector.extract_strided_slice %14 {offsets = [0, 24], sizes = [8, 8], strides = [1, 1]} : vector<8x32xbf16> to vector<8x8xbf16>
    %cst_24 = arith.constant dense<0.000000e+00> : vector<8x8xf32>
    %72 = tpu.matmul %69, %70, %cst_24 {dimension_numbers = #tpu.dot_dimension_numbers<[1], [1], [0], [0], [0, 0, 1, 0], [], []>} : vector<8x8xbf16>, vector<8x8xbf16>, vector<8x8xf32> -> vector<8x8xf32>
    %cst_25 = arith.constant 0.353553385 : f32
    %73 = vector.broadcast %cst_25 : f32 to vector<8x8xf32>
    %74 = arith.mulf %72, %73 : vector<8x8xf32>
    %cst_26 = arith.constant dense<0xFF800000> : vector<8xf32>
    %75 = vector.multi_reduction <maximumf>, %74, %cst_26 [1] : vector<8x8xf32> to vector<8xf32>
    %76 = vector.shape_cast %75 : vector<8xf32> to vector<8x1xf32>
    %77 = vector.broadcast %76 : vector<8x1xf32> to vector<8x8xf32>
    %78 = arith.subf %74, %77 : vector<8x8xf32>
    %79 = math.exp %78 : vector<8x8xf32>
    %cst_27 = arith.constant dense<0.000000e+00> : vector<8xf32>
    %80 = vector.multi_reduction <add>, %79, %cst_27 [1] : vector<8x8xf32> to vector<8xf32>
    %81 = vector.shape_cast %80 : vector<8xf32> to vector<8x1xf32>
    %82 = tpu.reciprocal %81 {approx = true} : vector<8x1xf32> -> vector<8x1xf32>
    %83 = vector.broadcast %82 : vector<8x1xf32> to vector<8x8xf32>
    %84 = arith.mulf %79, %83 : vector<8x8xf32>
    %85 = arith.truncf %84 : vector<8x8xf32> to vector<8x8xbf16>
    %cst_28 = arith.constant dense<0.000000e+00> : vector<8x8xf32>
    %86 = tpu.matmul %85, %71, %cst_28 {dimension_numbers = #tpu.dot_dimension_numbers<[1], [0], [0], [1], [0, 0, 1, 1], [], []>} : vector<8x8xbf16>, vector<8x8xbf16>, vector<8x8xf32> -> vector<8x8xf32>
    %87 = tpu.concatenate %32, %50, %68, %86 in 1 : vector<8x8xf32>, vector<8x8xf32>, vector<8x8xf32>, vector<8x8xf32> -> vector<8x32xf32>
    %88 = arith.truncf %87 : vector<8x32xf32> to vector<8x32xbf16>
    %c0_29 = arith.constant 0 : index
    %c0_30 = arith.constant 0 : index
    %89 = vector.load %arg8[%c0_29, %c0_30] : memref<32x32xbf16, #tpu.memory_space<vmem>>, vector<32x32xbf16>
    %cst_31 = arith.constant dense<0.000000e+00> : vector<8x32xf32>
    %90 = tpu.matmul %88, %89, %cst_31 {dimension_numbers = #tpu.dot_dimension_numbers<[1], [0], [0], [1], [0, 0, 1, 1], [], []>} : vector<8x32xbf16>, vector<32x32xbf16>, vector<8x32xf32> -> vector<8x32xf32>
    %c0_32 = arith.constant 0 : index
    %c0_33 = arith.constant 0 : index
    %91 = vector.load %arg9[%c0_32, %c0_33] : memref<1x32xf32, #tpu.memory_space<vmem>>, vector<1x32xf32>
    %92 = vector.broadcast %91 : vector<1x32xf32> to vector<8x32xf32>
    %93 = arith.addf %90, %92 : vector<8x32xf32>
    %94 = arith.addf %4, %93 : vector<8x32xf32>
    %c0_34 = arith.constant 0 : index
    %c0_35 = arith.constant 0 : index
    %95 = vector.load %arg14[%c0_34, %c0_35] : memref<1x32xf32, #tpu.memory_space<vmem>>, vector<1x32xf32>
    %c0_36 = arith.constant 0 : index
    %c0_37 = arith.constant 0 : index
    %96 = vector.load %arg15[%c0_36, %c0_37] : memref<1x32xf32, #tpu.memory_space<vmem>>, vector<1x32xf32>
    %cst_38 = arith.constant dense<0.000000e+00> : vector<8xf32>
    %97 = vector.multi_reduction <add>, %94, %cst_38 [1] : vector<8x32xf32> to vector<8xf32>
    %98 = vector.shape_cast %97 : vector<8xf32> to vector<8x1xf32>
    %cst_39 = arith.constant 3.200000e+01 : f32
    %99 = vector.broadcast %cst_39 : f32 to vector<8x1xf32>
    %100 = arith.divf %98, %99 : vector<8x1xf32>
    %101 = vector.broadcast %100 : vector<8x1xf32> to vector<8x32xf32>
    %102 = arith.subf %94, %101 : vector<8x32xf32>
    %103 = arith.mulf %102, %102 : vector<8x32xf32>
    %cst_40 = arith.constant dense<0.000000e+00> : vector<8xf32>
    %104 = vector.multi_reduction <add>, %103, %cst_40 [1] : vector<8x32xf32> to vector<8xf32>
    %105 = vector.shape_cast %104 : vector<8xf32> to vector<8x1xf32>
    %cst_41 = arith.constant 3.200000e+01 : f32
    %106 = vector.broadcast %cst_41 : f32 to vector<8x1xf32>
    %107 = arith.divf %105, %106 : vector<8x1xf32>
    %cst_42 = arith.constant 9.99999974E-6 : f32
    %108 = vector.broadcast %cst_42 : f32 to vector<8x1xf32>
    %109 = arith.addf %107, %108 : vector<8x1xf32>
    %110 = math.rsqrt %109 : vector<8x1xf32>
    %111 = vector.broadcast %110 : vector<8x1xf32> to vector<8x32xf32>
    %112 = arith.mulf %102, %111 : vector<8x32xf32>
    %113 = vector.broadcast %95 : vector<1x32xf32> to vector<8x32xf32>
    %114 = arith.mulf %112, %113 : vector<8x32xf32>
    %115 = vector.broadcast %96 : vector<1x32xf32> to vector<8x32xf32>
    %116 = arith.addf %114, %115 : vector<8x32xf32>
    %117 = arith.truncf %116 : vector<8x32xf32> to vector<8x32xbf16>
    %cst_43 = arith.constant 0.000000e+00 : f32
    %118 = vector.broadcast %cst_43 : f32 to vector<8x32xf32>
    %c0_44 = arith.constant 0 : index
    %c0_45 = arith.constant 0 : index
    %119 = vector.load %arg10[%c0_44, %c0_45] : memref<32x128xbf16, #tpu.memory_space<vmem>>, vector<32x128xbf16>
    %cst_46 = arith.constant dense<0.000000e+00> : vector<8x128xf32>
    %120 = tpu.matmul %117, %119, %cst_46 {dimension_numbers = #tpu.dot_dimension_numbers<[1], [0], [0], [1], [0, 0, 1, 1], [], []>} : vector<8x32xbf16>, vector<32x128xbf16>, vector<8x128xf32> -> vector<8x128xf32>
    %c0_47 = arith.constant 0 : index
    %c0_48 = arith.constant 0 : index
    %121 = vector.load %arg11[%c0_47, %c0_48] : memref<1x128xf32, #tpu.memory_space<vmem>>, vector<1x128xf32>
    %122 = vector.broadcast %121 : vector<1x128xf32> to vector<8x128xf32>
    %123 = arith.addf %120, %122 : vector<8x128xf32>
    %cst_49 = arith.constant 5.000000e-01 : f32
    %124 = vector.broadcast %cst_49 : f32 to vector<8x128xf32>
    %125 = arith.mulf %124, %123 : vector<8x128xf32>
    %cst_50 = arith.constant 0.707106769 : f32
    %126 = vector.broadcast %cst_50 : f32 to vector<8x128xf32>
    %127 = arith.mulf %123, %126 : vector<8x128xf32>
    %128 = math.erf %127 : vector<8x128xf32>
    %cst_51 = arith.constant 1.000000e+00 : f32
    %129 = vector.broadcast %cst_51 : f32 to vector<8x128xf32>
    %130 = arith.addf %129, %128 : vector<8x128xf32>
    %131 = arith.mulf %125, %130 : vector<8x128xf32>
    %132 = arith.truncf %131 : vector<8x128xf32> to vector<8x128xbf16>
    %c0_52 = arith.constant 0 : index
    %c0_53 = arith.constant 0 : index
    %133 = vector.load %arg12[%c0_52, %c0_53] : memref<128x32xbf16, #tpu.memory_space<vmem>>, vector<128x32xbf16>
    %cst_54 = arith.constant dense<0.000000e+00> : vector<8x32xf32>
    %134 = tpu.matmul %132, %133, %cst_54 {dimension_numbers = #tpu.dot_dimension_numbers<[1], [0], [0], [1], [0, 0, 1, 1], [], []>} : vector<8x128xbf16>, vector<128x32xbf16>, vector<8x32xf32> -> vector<8x32xf32>
    %135 = arith.addf %118, %134 : vector<8x32xf32>
    %c0_55 = arith.constant 0 : index
    %c0_56 = arith.constant 0 : index
    %136 = vector.load %arg13[%c0_55, %c0_56] : memref<1x32xf32, #tpu.memory_space<vmem>>, vector<1x32xf32>
    %137 = vector.broadcast %136 : vector<1x32xf32> to vector<8x32xf32>
    %138 = arith.addf %135, %137 : vector<8x32xf32>
    %139 = arith.addf %116, %138 : vector<8x32xf32>
    %c0_57 = arith.constant 0 : index
    %c0_58 = arith.constant 0 : index
    %140 = vector.load %arg16[%c0_57, %c0_58] : memref<1x32xf32, #tpu.memory_space<vmem>>, vector<1x32xf32>
    %c0_59 = arith.constant 0 : index
    %c0_60 = arith.constant 0 : index
    %141 = vector.load %arg17[%c0_59, %c0_60] : memref<1x32xf32, #tpu.memory_space<vmem>>, vector<1x32xf32>
    %cst_61 = arith.constant dense<0.000000e+00> : vector<8xf32>
    %142 = vector.multi_reduction <add>, %139, %cst_61 [1] : vector<8x32xf32> to vector<8xf32>
    %143 = vector.shape_cast %142 : vector<8xf32> to vector<8x1xf32>
    %cst_62 = arith.constant 3.200000e+01 : f32
    %144 = vector.broadcast %cst_62 : f32 to vector<8x1xf32>
    %145 = arith.divf %143, %144 : vector<8x1xf32>
    %146 = vector.broadcast %145 : vector<8x1xf32> to vector<8x32xf32>
    %147 = arith.subf %139, %146 : vector<8x32xf32>
    %148 = arith.mulf %147, %147 : vector<8x32xf32>
    %cst_63 = arith.constant dense<0.000000e+00> : vector<8xf32>
    %149 = vector.multi_reduction <add>, %148, %cst_63 [1] : vector<8x32xf32> to vector<8xf32>
    %150 = vector.shape_cast %149 : vector<8xf32> to vector<8x1xf32>
    %cst_64 = arith.constant 3.200000e+01 : f32
    %151 = vector.broadcast %cst_64 : f32 to vector<8x1xf32>
    %152 = arith.divf %150, %151 : vector<8x1xf32>
    %cst_65 = arith.constant 9.99999974E-6 : f32
    %153 = vector.broadcast %cst_65 : f32 to vector<8x1xf32>
    %154 = arith.addf %152, %153 : vector<8x1xf32>
    %155 = math.rsqrt %154 : vector<8x1xf32>
    %156 = vector.broadcast %155 : vector<8x1xf32> to vector<8x32xf32>
    %157 = arith.mulf %147, %156 : vector<8x32xf32>
    %158 = vector.broadcast %140 : vector<1x32xf32> to vector<8x32xf32>
    %159 = arith.mulf %157, %158 : vector<8x32xf32>
    %160 = vector.broadcast %141 : vector<1x32xf32> to vector<8x32xf32>
    %161 = arith.addf %159, %160 : vector<8x32xf32>
    %c0_66 = arith.constant 0 : index
    %c0_67 = arith.constant 0 : index
    %c0_68 = arith.constant 0 : index
    %162 = vector.load %arg18[%c0_66, %c0_67, %c0_68] : memref<1x8x32xf32, #tpu.memory_space<vmem>>, vector<1x8x32xf32>
    %163 = vector.shape_cast %162 : vector<1x8x32xf32> to vector<8x32xf32>
    %164 = vector.shape_cast %161 : vector<8x32xf32> to vector<1x8x32xf32>
    tpu.vector_store %arg18[%c0_66, %c0_67, %c0_68], %164 {strides = array<i32>} : memref<1x8x32xf32, #tpu.memory_space<vmem>>, vector<1x8x32xf32>,
    return
  }
  func.func @transform_0(%arg0: i32, %arg1: i32) -> (i32, i32, i32) {
    %c0_i32 = arith.constant 0 : i32
    %c0_i32_0 = arith.constant 0 : i32
    return %arg0, %arg1, %c0_i32 : i32, i32, i32
  }
  func.func @transform_1(%arg0: i32, %arg1: i32) -> (i32, i32, i32) {
    %c0_i32 = arith.constant 0 : i32
    %c0_i32_0 = arith.constant 0 : i32
    %c0_i32_1 = arith.constant 0 : i32
    return %arg0, %c0_i32, %c0_i32_0 : i32, i32, i32
  }
  func.func @transform_2(%arg0: i32, %arg1: i32) -> (i32, i32) {
    %c0_i32 = arith.constant 0 : i32
    %c0_i32_0 = arith.constant 0 : i32
    %c0_i32_1 = arith.constant 0 : i32
    return %c0_i32, %c0_i32_0 : i32, i32
  }
  func.func @transform_3(%arg0: i32, %arg1: i32) -> (i32, i32) {
    %c0_i32 = arith.constant 0 : i32
    %c0_i32_0 = arith.constant 0 : i32
    %c0_i32_1 = arith.constant 0 : i32
    return %c0_i32, %c0_i32_0 : i32, i32
  }
  func.func @transform_4(%arg0: i32, %arg1: i32) -> (i32, i32) {
    %c0_i32 = arith.constant 0 : i32
    %c0_i32_0 = arith.constant 0 : i32
    %c0_i32_1 = arith.constant 0 : i32
    return %c0_i32, %c0_i32_0 : i32, i32
  }
  func.func @transform_5(%arg0: i32, %arg1: i32) -> (i32, i32) {
    %c0_i32 = arith.constant 0 : i32
    %c0_i32_0 = arith.constant 0 : i32
    %c0_i32_1 = arith.constant 0 : i32
    return %c0_i32, %c0_i32_0 : i32, i32
  }
  func.func @transform_6(%arg0: i32, %arg1: i32) -> (i32, i32) {
    %c0_i32 = arith.constant 0 : i32
    %c0_i32_0 = arith.constant 0 : i32
    %c0_i32_1 = arith.constant 0 : i32
    return %c0_i32, %c0_i32_0 : i32, i32
  }
  func.func @transform_7(%arg0: i32, %arg1: i32) -> (i32, i32) {
    %c0_i32 = arith.constant 0 : i32
    %c0_i32_0 = arith.constant 0 : i32
    %c0_i32_1 = arith.constant 0 : i32
    return %c0_i32, %c0_i32_0 : i32, i32
  }
  func.func @transform_8(%arg0: i32, %arg1: i32) -> (i32, i32) {
    %c0_i32 = arith.constant 0 : i32
    %c0_i32_0 = arith.constant 0 : i32
    %c0_i32_1 = arith.constant 0 : i32
    return %c0_i32, %c0_i32_0 : i32, i32
  }
  func.func @transform_9(%arg0: i32, %arg1: i32) -> (i32, i32) {
    %c0_i32 = arith.constant 0 : i32
    %c0_i32_0 = arith.constant 0 : i32
    %c0_i32_1 = arith.constant 0 : i32
    return %c0_i32, %c0_i32_0 : i32, i32
  }
  func.func @transform_10(%arg0: i32, %arg1: i32) -> (i32, i32) {
    %c0_i32 = arith.constant 0 : i32
    %c0_i32_0 = arith.constant 0 : i32
    %c0_i32_1 = arith.constant 0 : i32
    return %c0_i32, %c0_i32_0 : i32, i32
  }
  func.func @transform_11(%arg0: i32, %arg1: i32) -> (i32, i32) {
    %c0_i32 = arith.constant 0 : i32
    %c0_i32_0 = arith.constant 0 : i32
    %c0_i32_1 = arith.constant 0 : i32
    return %c0_i32, %c0_i32_0 : i32, i32
  }
  func.func @transform_12(%arg0: i32, %arg1: i32) -> (i32, i32) {
    %c0_i32 = arith.constant 0 : i32
    %c0_i32_0 = arith.constant 0 : i32
    %c0_i32_1 = arith.constant 0 : i32
    return %c0_i32, %c0_i32_0 : i32, i32
  }
  func.func @transform_13(%arg0: i32, %arg1: i32) -> (i32, i32) {
    %c0_i32 = arith.constant 0 : i32
    %c0_i32_0 = arith.constant 0 : i32
    %c0_i32_1 = arith.constant 0 : i32
    return %c0_i32, %c0_i32_0 : i32, i32
  }
  func.func @transform_14(%arg0: i32, %arg1: i32) -> (i32, i32) {
    %c0_i32 = arith.constant 0 : i32
    %c0_i32_0 = arith.constant 0 : i32
    %c0_i32_1 = arith.constant 0 : i32
    return %c0_i32, %c0_i32_0 : i32, i32
  }
  func.func @transform_15(%arg0: i32, %arg1: i32) -> (i32, i32) {
    %c0_i32 = arith.constant 0 : i32
    %c0_i32_0 = arith.constant 0 : i32
    %c0_i32_1 = arith.constant 0 : i32
    return %c0_i32, %c0_i32_0 : i32, i32
  }
  func.func @transform_16(%arg0: i32, %arg1: i32) -> (i32, i32, i32) {
    %c0_i32 = arith.constant 0 : i32
    %c0_i32_0 = arith.constant 0 : i32
    return %arg0, %arg1, %c0_i32 : i32, i32, i32
  }
}

</mosaic_0001>

<bundles_post_ra>
// kernel: transformer_block.1
= control target key start
LH: loop header
LB: loop body
LE: loop exit
PB: predicated region body
PF: predicated region fallthrough
CT: control target
= control target key end

     0   :  { %s2339_s0 = inlined_call_operand.vmem [shape: f32[2,8,32], index: 0, kind: input, shape index: {}]   ;;  %s2340_s1 = inlined_call_operand.vmem [shape: bf16[2,8,32], index: 1, kind: input, shape index: {}]   ;;  %s2341_s2 = inlined_call_operand.vmem [shape: bf16[32,32], index: 2, kind: input, shape index: {}]   ;;  %s2342_s3 = inlined_call_operand.vmem [shape: f32[1,32], index: 3, kind: input, shape index: {}]   ;;  %s2343_s4 = inlined_call_operand.vmem [shape: bf16[32,64], index: 4, kind: input, shape index: {}]   ;;  %s2344_s5 = inlined_call_operand.vmem [shape: f32[1,64], index: 5, kind: input, shape index: {}]   ;;  %s2345_s6 = inlined_call_operand.vmem [shape: bf16[32,32], index: 6, kind: input, shape index: {}]   ;;  %s2346_s7 = inlined_call_operand.vmem [shape: f32[1,32], index: 7, kind: input, shape index: {}]   ;;  %s2347_s8 = inlined_call_operand.vmem [shape: bf16[32,128], index: 8, kind: input, shape index: {}]   ;;  %s2348_s9 = inlined_call_operand.vmem [shape: f32[1,128], index: 9, kind: input, shape index: {}]   ;;  %s2349_s10 = inlined_call_operand.vmem [shape: bf16[128,32], index: 10, kind: input, shape index: {}]   ;;  %s2350_s11 = inlined_call_operand.vmem [shape: f32[1,32], index: 11, kind: input, shape index: {}]   ;;  %s2351_s12 = inlined_call_operand.vmem [shape: f32[1,32], index: 12, kind: input, shape index: {}]   ;;  %s2352_s13 = inlined_call_operand.vmem [shape: f32[1,32], index: 13, kind: input, shape index: {}]   ;;  %s2353_s14 = inlined_call_operand.vmem [shape: f32[1,32], index: 14, kind: input, shape index: {}]   ;;  %s2354_s15 = inlined_call_operand.vmem [shape: f32[1,32], index: 15, kind: input, shape index: {}]   ;;  %s2355_s16 = inlined_call_operand.hbm [shape: f32[2,8,32], index: 16, kind: output, shape index: {}]  }
   0x1   :  { %2364 = sst [smem:[#allocation13_spill]] %s2339_s0 }
   0x2   :  { %2365 = sst [smem:[#allocation14_spill]] %s2340_s1 }
   0x3   :  { %2366 = sst [smem:[#allocation15_spill]] %s2343_s4 }
   0x4   :  { %2367 = sst [smem:[#allocation16_spill]] %s2355_s16 }
   0x5   :  { %21 = vsyncpa [#allocation4], 0 }
   0x6   :  { %23 = vsyncpa [#allocation4 + $0x1], 0  ;;  %s2051_s21 = smov 0   ;;  %s2053_s22 = smov 0  }
   0x7   :  { %s2055_s23 = smov 0   ;;  %s2057_s24 = smov 0  }
   0x8   :  { %s2059_s25 = smov 0   ;;  %s2061_s26 = smov 0  }
   0x9 LB: > { %2368 = sst [smem:[#allocation6_spill]] %s1931_s21  ;;  %s1580_s27 = sadd.s32 4294967295, %s1951_s26   ;;  %s1951_s26 = sphi %s2061_s26, %s29_s26   ;;  %s1947_s25 = sphi %s2059_s25, %s2388_s25   ;;  %s1943_s24 = sphi %s2057_s24, %s2387_s24   ;;  %s1939_s23 = sphi %s2055_s23, %s2386_s23   ;;  %s1935_s22 = sphi %s2053_s22, %s2390_s22   ;;  %s1931_s21 = sphi %s2051_s21, %s2389_s21  }
   0xa   : > { %2369 = sst [smem:[#allocation7_spill]] %s1939_s23  ;;  %s1581_s28 = sadd.s32 4294967294, %s1951_s26  }
   0xb   : > { %2370 = sst [smem:[#allocation8_spill]] %s1947_s25  ;;  %s41_s29 = sadd.s32 1, %s1947_s25 }
   0xc   : > { %2371 = sst [smem:[#allocation9_spill]] %s1951_s26  ;;  %s398_s30 = sadd.s32 1, %s1939_s23 }
   0xd   : > { %p43_p0 = scmp.ge.s32.totalorder %s41_s29, 2  ;;  %p408_p1 = scmp.ne.s32.totalorder %s1939_s23, %s1935_s22 }
   0xe   : > { %p409_p2 = scmp.eq.s32.totalorder %s1580_s27, 1  ;;  %p414_p3 = scmp.ne.s32.totalorder %s1935_s22, %s1931_s21 }
   0xf   : > { %s2392_s29 = smov (%p43_p0, %s41_s29), 0  ;;  %p415_p5 = scmp.eq.s32.totalorder %s1581_s28, 1 }
  0x10   : > { %2372 = sst [smem:[#allocation10_spill]] %s2392_s29  ;;  %p2091_p4 = por %p409_p2, %p408_p1 }
  0x11   : > { %s393_s17 = ssub.s32 %s1947_s25, %s2392_s29  ;;  %p1584_p6 = scmp.ge.s32.totalorder %s1951_s26, 1 }
  0x12   : > { %p396_p7 = scmp.eq.s32.totalorder %s393_s17, 0  ;;  %p2098_p8 = por %p415_p5, %p414_p3 }
  0x13   : > { %p492_p9 = scmp.lt.s32.totalorder %s1951_s26, 3 }
  0x14   : > { %s2374_s18 = scalar_select %p2098_p8, 1, 0 }
  0x15   : > { %s2104_s19 = scalar_select %p396_p7, %s1939_s23, %s398_s30  }
  0x16   : > { %2375 = sst [smem:[#allocation11_spill]] %s2374_s18  ;;  %p493_p10 = pnand %p1584_p6, %p492_p9 }
  0x17   : > { %2376 = sst [smem:[#allocation12_spill]] %s2104_s19  ;;  %s2377_s4 = sld [smem:[#allocation15_spill]] (!%p493_p10)  ;;  %v1953_v1 = vmov (!%p493_p10), 0.0   ;;  %vm1954_vm0 = vmmov (!%p493_p10), 0   ;;  %vm588_vm1 = vcmask (!%p493_p10), 261120   ;;  %v1836_v3 = vld [vmem:[%s2341_s2] sm:$0xff] (!%p493_p10)  }
  0x18   : > { %496 = sbr.rel (%p493_p10) target bundleno = 2578 (0xa12), region = 84  ;;  %1667 = vmatprep.subr.bf16.mxu1 (!%p493_p10), %v1953_v1  ;;  %1695 = vmatprep.subr.bf16.mxu0 (!%p493_p10), %v1953_v1  ;;  %p548_p11 = scmp.lt.s32.totalorder (!%p493_p10), %s1943_s24, 1  ;;  %v1837_v6 = vld [vmem:[%s2341_s2 + $0x8] sm:$0xff] (!%p493_p10)   ;;  %v1588_v8 = vld [vmem:[%s2344_s5] ss:$0 sm:$0xff] (!%p493_p10)  ;;  %vm633_vm2 = vcmask (!%p493_p10), 519168  }
  0x19   : > { %1671 = vmatprep.mubr.msk.bf16.mxu1 (!%p493_p10), %vm1954_vm0, %v1953_v1  ;;  %1697 = vmatprep.mubr.msk.bf16.mxu0 (!%p493_p10), %vm1954_vm0, %v1953_v1  ;;  %s2378_s25 = sld [smem:[#allocation13_spill]] (!%p493_p10)  ;;  %s2379_s1 = sld [smem:[#allocation14_spill]] (!%p493_p10)  ;;  %v1592_v15 = vld [vmem:[%s2342_s3] ss:$0 sm:$0xff] (!%p493_p10)  ;;  %vm706_vm3 = vcmask (!%p493_p10), 64512   ;;  %vm774_vm4 = vcmask (!%p493_p10), 1043456  }
  0x1a   : > { %s1956_s26 = smov (!%p493_p10), 120   ;;  %s1958_s18 = smov (!%p493_p10), 96   ;;  %vm1165_vm5 = vcmask (!%p493_p10), 130048   ;;  %vm1167_vm6 = vcmask (!%p493_p10), 195584  }
  0x1b   : > { %s1961_s20 = smov (!%p493_p10), 88   ;;  %s1962_s17 = smov (!%p493_p10), 8  }
  0x1c   : > { %s1964_s23 = smov (!%p493_p10), 24  }
  0x1d   : > { %v1834_v0 = vld [vmem:[%s2377_s4] sm:$0xff] (!%p493_p10)   ;;  %v1835_v2 = vld [vmem:[%s2377_s4 + $0x8] sm:$0xff] (!%p493_p10)  }
  0x1e   : > { %1668 = vmatpush3.bf16.msra.mxu1 (!%p493_p10), %v1834_v0 }
  0x1f   : > { %1669 = vmatprep.subr.bf16.mxu1 %v1953_v1  ;;  %s549_s30 = scalar_select %p548_p11, %s1943_s24, 1 }
  0x21   : > { %s1586_s29 = sshll.u32 %s549_s30, 3  ;;  %s1587_s28 = sshll.u32 %s549_s30, 2 }
  0x22   : > { %1670 = vmatpush3.bf16.msra.mxu1 %v1835_v2  ;;  %s554_s19 = scalar_lea.vmem %s2378_s25, %s1586_s29  ;;  %s558_s21 = scalar_lea.vmem %s2379_s1, %s1587_s28 }
  0x23   : > { %1675 = vmatprep.subr.bf16.mxu1 %v1953_v1  ;;  %v564_v4 = vld [vmem:[%s558_s21] sm:$0xf]  ;;  %s1955_s25 = smov 112   ;;  %s1957_s29 = smov 104  }
  0x24   : > { %v2131_v5 = vld [vmem:[%s554_s19] sm:$0xff]  ;;  %s1959_s19 = smov 80   ;;  %s1960_s30 = smov 72  }
  0x25   : > { %1672 = vmatmul.mubr.msk.bf16.vlgmr.msra.gmra.mrb[0].mxu1 %vm588_vm1, %v564_v4  ;;  %v636_v7 = vpack.c.bf16 %v2131_v5, %v2131_v5  ;;  %s1963_s21 = smov 16   ;;  %s1627_s28 = sshll.u32 %s1943_s24, 7 }
  0x26   : > { %1676 = vmatpush3.bf16.msra.mxu1 %v1836_v3  ;;  %1679 = vmatprep.mubr.msk.bf16.mxu1 %vm1954_vm0, %v1953_v1  ;;  %s1965_s24 = smov [#allocation3]  }
  0x27   : > { %1677 = vmatprep.subr.bf16.mxu1 %v1953_v1 }
  0x2a   : > { %1678 = vmatpush3.bf16.msra.mxu1 %v1837_v6 }
  0x2b   : > { %1683 = vmatprep.subr.bf16.mxu1 %v1953_v1 }
  0x2d   : > { %1680 = vmatmul.mubr.msk.bf16.vlgmr.msra.gmra.mrb[4].mxu1 %vm588_vm1, %v636_v7 }
  0x2e   : > { %1685 = vmatprep.mubr.msk.bf16.mxu1 %vm1954_vm0, %v1953_v1 }
  0xf8   : > { %v626_v9 = vpop.f32.mrb[0].mxu1 }
  0xf9   : > { %v627_v10 = vadd.f32 %v1588_v8, %v626_v9  ;;  %v1673_v11 = vpop.f32.mrb[1].mxu1 }
  0xfa   : > { %v629_v12 = vpop.f32.mrb[2].mxu1 }
  0xfb   : > { %v632_v13 = vpack.c.bf16 %v627_v10, %v627_v10  ;;  %v1674_v14 = vpop.f32.mrb[3].mxu1 }
  0xfd   : > { %634 = vst.msk [vmem:[#allocation2] sm:$0xf] %vm633_vm2, %v632_v13 }
 0x100   : > { %v698_v16 = vpop.f32.mrb[4].mxu1 }
 0x101   : > { %v1681_v17 = vpop.f32.mrb[5].mxu1  ;;  %v699_v19 = vadd.f32 %v1592_v15, %v698_v16 }
 0x102   : > { %v701_v18 = vpop.f32.mrb[6].mxu1 }
 0x103   : > { %v1682_v20 = vpop.f32.mrb[7].mxu1  ;;  %v704_v24 = vpack.c.bf16 %v699_v19, %v699_v19 }
 0x104   : > { %v705_v21 = vld [vmem:[#allocation2] sm:$0xf] }
 0x105   : > { %v711_v22 = vsel %vm706_vm3, %v705_v21, 0  ;;  %v2153_v23 = vcombine.low %v705_v21, %v705_v21 }
 0x106   : > { %1684 = vmatpush3.bf16.xpose.msra.mxu1 %v711_v22 }
 0x107   : > { %932 = vrot.lane.b32.xlu1 %v2153_v23, %s1955_s25  ;;  %821 = vrot.lane.b32.xlu0 %v2153_v23, %s1956_s26 }
 0x108   : > { %1689 = vmatprep.subr.bf16.mxu1 %v1953_v1 }
 0x10b   : > { %930 = vrot.lane.b32.xlu1 %v704_v24, %s1955_s25  ;;  %819 = vrot.lane.b32.xlu0 %v704_v24, %s1956_s26 }
 0x10d   : > { %1686 = vmatmul.mubr.msk.bf16.vlgmr.msra.gmra.mrb[8].mxu1 %vm706_vm3, %v704_v24 }
 0x10e   : > { %1691 = vmatprep.mubr.msk.bf16.mxu1 %vm1954_vm0, %v1953_v1 }
 0x10f   : > { %1041 = vrot.lane.b32.xlu1 %v704_v24, %s1957_s29  ;;  %1043 = vrot.lane.b32.xlu0 %v2153_v23, %s1957_s29  ;;  %s545_s29 = sand.u32 1, %s1935_s22  }
 0x110   : > { %s1483_s26 = scalar_lea.sflag [#allocation4], %s545_s29 }
 0x179   : > { %v822_v25 = vpop.permute.xlu0 %821  ;;  %v933_v27 = vpop.permute.xlu1 %932 }
 0x17a   : > { %v827_v26 = vsel %vm706_vm3, %v822_v25, 0  ;;  %v938_v29 = vsel %vm706_vm3, %v933_v27, 0 }
 0x17b   : > { %1696 = vmatpush3.bf16.xpose.msra.mxu0 %v827_v26 }
 0x17c   : > { %1707 = vmatprep.subr.bf16.mxu0 %v1953_v1 }
 0x17d   : > { %v820_v28 = vpop.permute.xlu0 %819  ;;  %v931_v31 = vpop.permute.xlu1 %930 }
 0x181   : > { %v1044_v30 = vpop.permute.xlu0 %1043  ;;  %v1042_v33 = vpop.permute.xlu1 %1041 }
 0x182   : > { %1698 = vmatmul.mubr.msk.bf16.vlgmr.msra.gmra.mrb[0].mxu0 %vm706_vm3, %v820_v28  ;;  %v1049_v32 = vsel %vm706_vm3, %v1044_v30, 0 }
 0x183   : > { %1708 = vmatpush3.bf16.xpose.msra.mxu0 %v938_v29  ;;  %1709 = vmatprep.mubr.msk.bf16.mxu0 %vm1954_vm0, %v1953_v1 }
 0x184   : > { %1719 = vmatprep.subr.bf16.mxu0 %v1953_v1 }
 0x18a   : > { %1710 = vmatmul.mubr.msk.bf16.vlgmr.msra.gmra.mrb[4].mxu0 %vm706_vm3, %v931_v31 }
 0x18b   : > { %1720 = vmatpush3.bf16.xpose.msra.mxu0 %v1049_v32  ;;  %1721 = vmatprep.mubr.msk.bf16.mxu0 %vm1954_vm0, %v1953_v1 }
 0x18c   : > { %1731 = vmatprep.subr.bf16.mxu0 %v1953_v1 }
 0x192   : > { %1722 = vmatmul.mubr.msk.bf16.vlgmr.msra.gmra.mrb[8].mxu0 %vm706_vm3, %v1042_v33 }
 0x193   : > { %1735 = vmatprep.mubr.msk.bf16.mxu0 %vm1954_vm0, %v1953_v1 }
 0x1e0   : > { %v747_v34 = vpop.f32.mrb[8].mxu1 }
 0x1e1   : > { %v753_v35 = vmul.f32 0.35355338, %v747_v34  ;;  %v1687_v36 = vpop.f32.mrb[9].mxu1 }
 0x1e2   : > { %v750_v37 = vpop.f32.mrb[10].mxu1 }
 0x1e3   : > { %v1688_v38 = vpop.f32.mrb[11].mxu1  ;;  %v754_v39 = vsel %vm706_vm3, %v753_v35, -inf }
 0x1e4   : > { %755 = vmax.xlane.f32.xlu0 %v754_v39 }
 0x255   : > { %v863_v40 = vpop.f32.mrb[0].mxu0 }
 0x256   : > { %v869_v41 = vmul.f32 0.35355338, %v863_v40  ;;  %v1699_v42 = vpop.f32.mrb[1].mxu0 }
 0x257   : > { %v866_v43 = vpop.f32.mrb[2].mxu0 }
 0x258   : > { %v1700_v44 = vpop.f32.mrb[3].mxu0  ;;  %v870_v45 = vsel %vm706_vm3, %v869_v41, -inf }
 0x259   : > { %871 = vmax.xlane.f32.xlu1 %v870_v45  ;;  %v1839_v44 = vld [vmem:[%s2345_s6] sm:$0xff]  }
 0x25a   : > { %1732 = vmatpush3.bf16.msra.mxu0 %v1839_v44 }
 0x25b   : > { %1733 = vmatprep.subr.bf16.mxu0 %v1953_v1 }
 0x25d   : > { %v974_v46 = vpop.f32.mrb[4].mxu0 }
 0x25e   : > { %v980_v47 = vmul.f32 0.35355338, %v974_v46  ;;  %v1711_v48 = vpop.f32.mrb[5].mxu0 }
 0x25f   : > { %v977_v49 = vpop.f32.mrb[6].mxu0 }
 0x260   : > { %v1712_v50 = vpop.f32.mrb[7].mxu0  ;;  %v981_v51 = vsel %vm706_vm3, %v980_v47, -inf  ;;  %v1840_v49 = vld [vmem:[%s2345_s6 + $0x8] sm:$0xff]  }
 0x261   : > { %982 = vmax.xlane.f32.xlu0 %v981_v51  ;;  %1734 = vmatpush3.bf16.msra.mxu0 %v1840_v49 }
 0x262   : > { %1747 = vmatprep.subr.bf16.mxu0 %v1953_v1 }
 0x265   : > { %v1085_v52 = vpop.f32.mrb[8].mxu0 }
 0x266   : > { %v1091_v53 = vmul.f32 0.35355338, %v1085_v52  ;;  %v1723_v54 = vpop.f32.mrb[9].mxu0 }
 0x267   : > { %v1088_v55 = vpop.f32.mrb[10].mxu0 }
 0x268   : > { %v1724_v56 = vpop.f32.mrb[11].mxu0  ;;  %v1092_v57 = vsel %vm706_vm3, %v1091_v53, -inf }
 0x269   : > { %1093 = vmax.xlane.f32.xlu0 %v1092_v57 }
 0x271   : > { %v756_v58 = vpop.xlane.xlu0 %755 }
 0x272   : > { %v757_v59 = vsub.f32 %v753_v35, %v756_v58 }
 0x274   : > { %v758_v60 = vmul.f32 1.442695, %v757_v59 }
 0x276   : > { %1851 = vpow2.f32 %v758_v60 }
 0x280   : > { %v1852_v61 = vpop.eup %1851 }
 0x281   : > { %v760_v62 = vsel %vm706_vm3, %v1852_v61, 0.0 }
 0x282   : > { %761 = vadd.xlane.f32.xlu1 %v760_v62 }
 0x293   : > { %769 = vrot.lane.b32.xlu1 %v2153_v23, %s1958_s18  ;;  %s1585_s18 = sshll.u32 %s545_s29, 3 }
 0x2e6   : > { %v872_v63 = vpop.xlane.xlu1 %871 }
 0x2e7   : > { %v873_v0 = vsub.f32 %v869_v41, %v872_v63 }
 0x2e9   : > { %v874_v2 = vmul.f32 1.442695, %v873_v0 }
 0x2eb   : > { %1853 = vpow2.f32 %v874_v2  ;;  %v1605_v2 = vld [vmem:[%s2346_s7] ss:$0 sm:$0xff] }
 0x2ee   : > { %v983_v3 = vpop.xlane.xlu0 %982 }
 0x2ef   : > { %v984_v4 = vsub.f32 %v980_v47, %v983_v3 }
 0x2f1   : > { %v985_v6 = vmul.f32 1.442695, %v984_v4 }
 0x2f3   : > { %1855 = vpow2.f32 %v985_v6 }
 0x2f5   : > { %v1854_v7 = vpop.eup %1853 }
 0x2f6   : > { %v1094_v8 = vpop.xlane.xlu0 %1093  ;;  %v876_v9 = vsel %vm706_vm3, %v1854_v7, 0.0 }
 0x2f7   : > { %v1095_v10 = vsub.f32 %v1091_v53, %v1094_v8  ;;  %877 = vadd.xlane.f32.xlu0 %v876_v9 }
 0x2f9   : > { %v1096_v11 = vmul.f32 1.442695, %v1095_v10 }
 0x2fb   : > { %1857 = vpow2.f32 %v1096_v11 }
 0x2fd   : > { %v1856_v12 = vpop.eup %1855 }
 0x2fe   : > { %v987_v13 = vsel %vm706_vm3, %v1856_v12, 0.0 }
 0x2ff   : > { %988 = vadd.xlane.f32.xlu1 %v987_v13 }
 0x305   : > { %v1858_v14 = vpop.eup %1857 }
 0x306   : > { %v1098_v15 = vsel %vm706_vm3, %v1858_v14, 0.0 }
 0x307   : > { %1099 = vadd.xlane.f32.xlu0 %v1098_v15 }
 0x30f   : > { %v762_v16 = vpop.xlane.xlu1 %761 }
 0x310   : > { %1859 = vrcp.f32 %v762_v16  ;;  %993 = vrot.lane.b32.xlu1 %v2153_v23, %s1959_s19  ;;  %v1841_v16 = vld [vmem:[%s2347_s8] sm:$0xff]  }
 0x313   : > { %v770_v17 = vpop.permute.xlu1 %769 }
 0x314   : > { %v776_v18 = vsel %vm774_vm4, %v770_v17, 0  ;;  %1104 = vrot.lane.b32.xlu1 %v2153_v23, %s1960_s30  ;;  %v1842_v17 = vld [vmem:[%s2347_s8 + $0x8] sm:$0xff]  }
 0x315   : > { %1690 = vmatpush3.bf16.msra.mxu1 %v776_v18  ;;  %v1844_v18 = vld [vmem:[%s2349_s10 + $0x8] sm:$0xff]  }
 0x316   : > { %1701 = vmatprep.subr.bf16.mxu1 %v1953_v1 }
 0x31a   : > { %v1860_v19 = vpop.eup %1859 }
 0x31b   : > { %v764_v20 = vmul.f32 %v1860_v19, %v1852_v61  ;;  %v1845_v19 = vld [vmem:[%s2349_s10 + $0x10] sm:$0xff]  }
 0x31d   : > { %882 = vrot.lane.b32.xlu0 %v2153_v23, %s1961_s20  ;;  %v765_v21 = vpack.c.bf16 %v764_v20, %v764_v20 }
 0x31f   : > { %1692 = vmatmul.mubr.msk.bf16.vlgmr.msra.gmra.mrb[12].mxu1 %vm706_vm3, %v765_v21 }
 0x320   : > { %1703 = vmatprep.mubr.msk.bf16.mxu1 %vm1954_vm0, %v1953_v1 }
 0x384   : > { %v878_v22 = vpop.xlane.xlu0 %877 }
 0x385   : > { %1861 = vrcp.f32 %v878_v22 }
 0x38c   : > { %v989_v24 = vpop.xlane.xlu1 %988 }
 0x38d   : > { %1863 = vrcp.f32 %v989_v24 }
 0x38f   : > { %v1862_v25 = vpop.eup %1861 }
 0x390   : > { %v880_v27 = vmul.f32 %v1862_v25, %v1854_v7  ;;  %v994_v30 = vpop.permute.xlu1 %993  ;;  %v1609_v25 = vld [vmem:[%s2351_s12] ss:$0 sm:$0xff] }
 0x391   : > { %v999_v32 = vsel %vm774_vm4, %v994_v30, 0 }
 0x392   : > { %v881_v23 = vpack.c.bf16 %v880_v27, %v880_v27  ;;  %v1610_v27 = vld [vmem:[%s2352_s13] ss:$0 sm:$0xff] }
 0x394   : > { %v1100_v26 = vpop.xlane.xlu0 %1099  ;;  %v1105_v34 = vpop.permute.xlu1 %1104 }
 0x395   : > { %1865 = vrcp.f32 %v1100_v26  ;;  %v1110_v37 = vsel %vm774_vm4, %v1105_v34, 0  ;;  %v1850_v34 = vld [vmem:[%s2349_s10 + $0x38] sm:$0xff]  }
 0x397   : > { %v1864_v31 = vpop.eup %1863 }
 0x398   : > { %v883_v28 = vpop.permute.xlu0 %882  ;;  %v991_v33 = vmul.f32 %v1864_v31, %v1856_v12  ;;  %v1847_v31 = vld [vmem:[%s2349_s10 + $0x20] sm:$0xff]  }
 0x399   : > { %v888_v29 = vsel %vm774_vm4, %v883_v28, 0 }
 0x39a   : > { %1702 = vmatpush3.bf16.msra.mxu1 %v888_v29  ;;  %v992_v35 = vpack.c.bf16 %v991_v33, %v991_v33  ;;  %v1849_v33 = vld [vmem:[%s2349_s10 + $0x30] sm:$0xff]  }
 0x39b   : > { %1713 = vmatprep.subr.bf16.mxu1 %v1953_v1 }
 0x39d   : > { %1704 = vmatmul.mubr.msk.bf16.vlgmr.msra.gmra.mrb[16].mxu1 %vm706_vm3, %v881_v23  ;;  %v1846_v23 = vld [vmem:[%s2349_s10 + $0x18] sm:$0xff]  }
 0x39e   : > { %1714 = vmatpush3.bf16.msra.mxu1 %v999_v32  ;;  %1715 = vmatprep.mubr.msk.bf16.mxu1 %vm1954_vm0, %v1953_v1  ;;  %v1848_v32 = vld [vmem:[%s2349_s10 + $0x28] sm:$0xff]  }
 0x39f   : > { %1725 = vmatprep.subr.bf16.mxu1 %v1953_v1  ;;  %v1866_v36 = vpop.eup %1865 }
 0x3a0   : > { %v1102_v38 = vmul.f32 %v1866_v36, %v1858_v14 }
 0x3a2   : > { %v1103_v39 = vpack.c.bf16 %v1102_v38, %v1102_v38 }
 0x3a5   : > { %1716 = vmatmul.mubr.msk.bf16.vlgmr.msra.gmra.mrb[20].mxu1 %vm706_vm3, %v992_v35  ;;  %v1611_v35 = vld [vmem:[%s2348_s9] ss:$0 sm:$0xff] }
 0x3a6   : > { %1726 = vmatpush3.bf16.msra.mxu1 %v1110_v37  ;;  %1727 = vmatprep.mubr.msk.bf16.mxu1 %vm1954_vm0, %v1953_v1 }
 0x3a7   : > { %1739 = vmatprep.subr.bf16.mxu1 %v1953_v1 }
 0x3ad   : > { %1728 = vmatmul.mubr.msk.bf16.vlgmr.msra.gmra.mrb[24].mxu1 %vm706_vm3, %v1103_v39 }
 0x3ae   : > { %1743 = vmatprep.mubr.msk.bf16.mxu1 %vm1954_vm0, %v1953_v1  ;;  %1740 = vmatpush3.bf16.msra.mxu1 %v1841_v16 }
 0x3af   : > { %1741 = vmatprep.subr.bf16.mxu1 %v1953_v1 }
 0x3b2   : > { %1742 = vmatpush3.bf16.msra.mxu1 %v1842_v17 }
 0x3f2   : > { %v812_v40 = vpop.f32.mrb[12].mxu1 }
 0x3f3   : > { %v1693_v41 = vpop.f32.mrb[13].mxu1 }
 0x3f4   : > { %v815_v42 = vpop.f32.mrb[14].mxu1 }
 0x3f5   : > { %v1694_v43 = vpop.f32.mrb[15].mxu1 }
 0x470   : > { %v924_v45 = vpop.f32.mrb[16].mxu1 }
 0x471   : > { %1153 = vrot.lane.b32.xlu0 %v924_v45, %s1962_s17  ;;  %v1705_v46 = vpop.f32.mrb[17].mxu1  ;;  %s547_s17 = scalar_lea.vmem [#allocation3], %s1585_s18  ;;  %s1877_s18 = sshll.u32 %s1965_s24, 4  ;;  %s1878_s18 = int_to_ptr.vmem [resolvable:$false] %s1877_s18 }
 0x472   : > { %v927_v47 = vpop.f32.mrb[18].mxu1  ;;  %v1615_v46 = vld [vmem:[%s2350_s11] ss:$0 sm:$0xff]  ;;  %s1497_s4 = sshll.u32 %s547_s17, 4  ;;  %s1879_s30 = scalar_lea.vmem %s1878_s18, 256  ;;  %s2293_s4 = int_to_ptr.vmem [resolvable:$true] %s1497_s4 }
 0x473   : > { %v1706_v48 = vpop.f32.mrb[19].mxu1  ;;  %s1873_s19 = scalar_lea.vmem %s2293_s4, 128  ;;  %p1880_p1 = scmp.lt.s32.totalorder %s2293_s4, %s1878_s18 }
 0x474   : > { %p1874_p12 = scmp.ne.s32.totalorder %s2293_s4, %s1873_s19  ;;  %p1881_p2 = scmp.lt.s32.totalorder %s1879_s30, %s1873_s19 }
 0x476   : > { %p1875_p13 = pnand %p1874_p12, %p2091_p4  ;;  %p1882_p3 = por %p1881_p2, %p1880_p1 }
 0x478   : > { %v1035_v50 = vpop.f32.mrb[20].mxu1  ;;  %p1876_p0 = pneg %p1875_p13 }
 0x479   : > { %1157 = vrot.lane.b32.xlu1 %v1035_v50, %s1963_s21  ;;  %v1717_v51 = vpop.f32.mrb[21].mxu1 }
 0x47a   : > { %v1038_v52 = vpop.f32.mrb[22].mxu1  ;;  %p1883_p5 = pnand %p1882_p3, %p1876_p0 }
 0x47b   : > { %v1718_v53 = vpop.f32.mrb[23].mxu1 }
 0x480   : > { %v1146_v54 = vpop.f32.mrb[24].mxu1 }
 0x481   : > { %1161 = vrot.lane.b32.xlu0 %v1146_v54, %s1964_s23  ;;  %v1729_v55 = vpop.f32.mrb[25].mxu1  ;;  %s2380_s23 = sld [smem:[#allocation16_spill]] }
 0x482   : > { %v1149_v56 = vpop.f32.mrb[26].mxu1 }
 0x483   : > { %v1730_v57 = vpop.f32.mrb[27].mxu1 }
 0x487   : > { %s2381_s1 = smov %s2380_s23  ;;  %s2291_s25 = scalar_lea.hbm %s2380_s23, %s1627_s28 }
 0x4e3   : > { %v1154_v58 = vpop.permute.xlu0 %1153 }
 0x4e4   : > { %v1164_v60 = vsel %vm706_vm3, %v812_v40, %v1154_v58 }
 0x4eb   : > { %v1158_v59 = vpop.permute.xlu1 %1157 }
 0x4ec   : > { %v1166_v61 = vsel %vm1165_vm5, %v1164_v60, %v1158_v59 }
 0x4f3   : > { %v1162_v62 = vpop.permute.xlu0 %1161 }
 0x4f4   : > { %v1168_v63 = vsel %vm1167_vm6, %v1166_v61, %v1162_v62 }
 0x4f5   : > { %v1169_v0 = vpack.c.bf16 %v1168_v63, %v1168_v63  ;;  %v1624_v63 = vld [vmem:[%s2353_s14] ss:$0 sm:$0xff] }
 0x4f7   : > { %1736 = vmatmul.mubr.msk.bf16.vlgmr.msra.gmra.mrb[12].mxu0 %vm588_vm1, %v1169_v0 }
 0x4f8   : > { %1763 = vmatprep.mubr.msk.bf16.mxu0 %vm1954_vm0, %v1953_v1 }
 0x5ca   : > { %v1230_v3 = vpop.f32.mrb[12].mxu0 }
 0x5cb   : > { %v1231_v4 = vadd.f32 %v1605_v2, %v1230_v3  ;;  %v1737_v6 = vpop.f32.mrb[13].mxu0  ;;  %v1625_v2 = vld [vmem:[%s2354_s15] ss:$0 sm:$0xff] }
 0x5cc   : > { %v1233_v7 = vpop.f32.mrb[14].mxu0 }
 0x5cd   : > { %v1738_v8 = vpop.f32.mrb[15].mxu0  ;;  %v1236_v9 = vadd.f32 %v1231_v4, %v2131_v5  ;;  %v1843_v5 = vld [vmem:[%s2349_s10] sm:$0xff]  }
 0x5ce   : > { %1748 = vmatpush3.bf16.msra.mxu0 %v1843_v5 }
 0x5cf   : > { %v1239_v10 = vsel %vm588_vm1, %v1236_v9, 0.0  ;;  %1749 = vmatprep.subr.bf16.mxu0 %v1953_v1 }
 0x5d0   : > { %1240 = vadd.xlane.f32.xlu1 %v1239_v10 }
 0x5d2   : > { %1750 = vmatpush3.bf16.msra.mxu0 %v1844_v18 }
 0x5d3   : > { %1751 = vmatprep.subr.bf16.mxu0 %v1953_v1 }
 0x5d6   : > { %1752 = vmatpush3.bf16.msra.mxu0 %v1845_v19 }
 0x5d7   : > { %1753 = vmatprep.subr.bf16.mxu0 %v1953_v1 }
 0x5da   : > { %1754 = vmatpush3.bf16.msra.mxu0 %v1846_v23 }
 0x5db   : > { %1755 = vmatprep.subr.bf16.mxu0 %v1953_v1 }
 0x5de   : > { %1756 = vmatpush3.bf16.msra.mxu0 %v1847_v31 }
 0x5df   : > { %1757 = vmatprep.subr.bf16.mxu0 %v1953_v1 }
 0x5e2   : > { %1758 = vmatpush3.bf16.msra.mxu0 %v1848_v32 }
 0x5e3   : > { %1759 = vmatprep.subr.bf16.mxu0 %v1953_v1 }
 0x5e6   : > { %1760 = vmatpush3.bf16.msra.mxu0 %v1849_v33 }
 0x5e7   : > { %1761 = vmatprep.subr.bf16.mxu0 %v1953_v1 }
 0x5ea   : > { %1762 = vmatpush3.bf16.msra.mxu0 %v1850_v34 }
 0x65d   : > { %v1241_v11 = vpop.xlane.xlu1 %1240 }
 0x65e   : > { %v1243_v12 = vmul.f32 0.03125, %v1241_v11 }
 0x660   : > { %v1244_v13 = vsub.f32 %v1236_v9, %v1243_v12 }
 0x662   : > { %v1245_v14 = vmul.f32 %v1244_v13, %v1244_v13 }
 0x664   : > { %v1246_v15 = vsel %vm588_vm1, %v1245_v14, 0.0 }
 0x665   : > { %1247 = vadd.xlane.f32.xlu0 %v1246_v15 }
 0x6f2   : > { %v1248_v20 = vpop.xlane.xlu0 %1247 }
 0x6f3   : > { %v1249_v21 = vmul.f32 0.03125, %v1248_v20 }
 0x6f5   : > { %v1250_v22 = vadd.f32 1e-05, %v1249_v21 }
 0x6f7   : > { %1867 = vrsqrt.f32 %v1250_v22 }
 0x701   : > { %v1868_v24 = vpop.eup %1867 }
 0x702   : > { %v1252_v26 = vmul.f32 %v1868_v24, %v1244_v13 }
 0x704   : > { %v1259_v28 = vmul.f32 %v1609_v25, %v1252_v26 }
 0x706   : > { %v1266_v29 = vadd.f32 %v1610_v27, %v1259_v28 }
 0x708   : > { %v1267_v30 = vpack.c.bf16 %v1266_v29, %v1266_v29 }
 0x70a   : > { %1744 = vmatmul.mubr.msk.bf16.vlgmr.msra.gmra.mrb[28].mxu1 %vm588_vm1, %v1267_v30 }
 0x7dd   : > { %v1328_v36 = vpop.f32.mrb[28].mxu1 }
 0x7de   : > { %v1329_v37 = vadd.f32 %v1611_v35, %v1328_v36  ;;  %v1745_v38 = vpop.f32.mrb[29].mxu1 }
 0x7df   : > { %v1331_v39 = vpop.f32.mrb[30].mxu1 }
 0x7e0   : > { %v1335_v40 = vmul.f32 0.70710677, %v1329_v37  ;;  %v1746_v41 = vpop.f32.mrb[31].mxu1  ;;  %v1334_v43 = vmul.f32 0.5, %v1329_v37 }
 0x7e2   : > { %1869 = verf.f32 %v1335_v40 }
 0x7ec   : > { %v1870_v42 = vpop.eup %1869 }
 0x7ed   : > { %v1337_v44 = vadd.f32 1.0, %v1870_v42 }
 0x7ef   : > { %v1338_v1 = vmul.f32 %v1337_v44, %v1334_v43 }
 0x7f1   : > { %v1339_v45 = vpack.c.bf16 %v1338_v1, %v1338_v1 }
 0x7f3   : > { %1764 = vmatmul.mubr.bf16.vlgmr.msra.gmra.mrb[16].mxu0 %v1339_v45 }
 0x8c6   : > { %v1445_v47 = vpop.f32.mrb[16].mxu0 }
 0x8c7   : > { %v1446_v48 = vadd.f32 %v1615_v46, %v1445_v47  ;;  %v1765_v49 = vpop.f32.mrb[17].mxu0 }
 0x8c8   : > { %v1448_v50 = vpop.f32.mrb[18].mxu0 }
 0x8c9   : > { %v1766_v51 = vpop.f32.mrb[19].mxu0  ;;  %v1451_v52 = vadd.f32 %v1446_v48, %v1266_v29 }
 0x8cb   : > { %v1454_v53 = vsel %vm588_vm1, %v1451_v52, 0.0 }
 0x8cc   : > { %1455 = vadd.xlane.f32.xlu0 %v1454_v53 }
 0x959   : > { %v1456_v54 = vpop.xlane.xlu0 %1455 }
 0x95a   : > { %v1457_v55 = vmul.f32 0.03125, %v1456_v54 }
 0x95c   : > { %v1458_v56 = vsub.f32 %v1451_v52, %v1457_v55 }
 0x95e   : > { %v1459_v57 = vmul.f32 %v1458_v56, %v1458_v56 }
 0x960   : > { %v1460_v58 = vsel %vm588_vm1, %v1459_v57, 0.0 }
 0x961   : > { %1461 = vadd.xlane.f32.xlu1 %v1460_v58 }
 0x9ee   : > { %v1462_v59 = vpop.xlane.xlu1 %1461 }
 0x9ef   : > { %v1463_v60 = vmul.f32 0.03125, %v1462_v59 }
 0x9f1   : > { %v1464_v61 = vadd.f32 1e-05, %v1463_v60 }
 0x9f3   : > { %1871 = vrsqrt.f32 %v1464_v61 }
 0x9fd   : > { %v1872_v62 = vpop.eup %1871 }
 0x9fe   : > { %v1466_v0 = vmul.f32 %v1872_v62, %v1458_v56 }
 0xa00   : > { %v1473_v3 = vmul.f32 %v1624_v63, %v1466_v0 }
 0xa02   : > { %v1480_v4 = vadd.f32 %v1625_v2, %v1473_v3 }
 0xa04   : > { %1481 = vst.msk [vmem:[%s547_s17] sm:$0xff] %vm588_vm1, %v1480_v4 }
 0xa05   : > { %1886 = shalt.err (!%p1883_p5)
}
 0xa06   : > { %s1887_s29 = scalar_lea.hbm %s2291_s25, 128  ;;  %s1891_s28 = scalar_lea.hbm %s2381_s1, 256 }
 0xa07   : > { %p1888_p6 = scmp.ne.s32.totalorder %s2291_s25, %s1887_s29  ;;  %p1892_p10 = scmp.lt.u32.totalorder %s2291_s25, %s2381_s1 }
 0xa08   : > { %p1893_p11 = scmp.lt.u32.totalorder %s1891_s28, %s1887_s29  ;;  %p1895_p13 = scmp.lt.u32.totalorder %s1887_s29, %s2291_s25 }
 0xa09   : > { %p1889_p7 = pnand %p1888_p6, %p2091_p4 }
 0xa0a   : > { %p1894_p12 = por %p1893_p11, %p1892_p10 }
 0xa0b   : > { %p1890_p9 = pneg %p1889_p7 }
 0xa0c   : > { %p1896_p0 = por %p1895_p13, %p1894_p12 }
 0xa0e   : > { %p1897_p1 = pnand %p1896_p0, %p1890_p9 }
 0xa10   : > { %1900 = shalt.err (!%p1897_p1)
}
 0xa11   : > { %1767 = dma.vmem_to_hbm [thread:$0]  (%p2091_p4), %s2293_s4, 128, %s2291_s25, %s1483_s26  }
 0xa12 PF: > { %s2382_s21 = sld [smem:[#allocation9_spill]]  ;;  %s2383_s23 = sld [smem:[#allocation6_spill]] }
 0xa18   : > { %p1773_p2 = scmp.ge.s32.totalorder %s2382_s21, 2  ;;  %s1509_s24 = sand.u32 1, %s2383_s23  }
 0xa19   : > { %s1510_s18 = scalar_lea.sflag [#allocation4], %s1509_s24 }
 0xa1a   : > { %p1770_p3 = pnand %p1773_p2, %p2098_p8 }
 0xa1c   : > { %1926 = dma.done.wait (!%p1770_p3), %s1510_s18, 128  }
 0xa1d   : > { %1928 = vsyncadd (!%p1770_p3), %s1510_s18, 4294967168  ;;  %s29_s26 = sadd.s32 1, %s2382_s21   ;;  %s2385_s30 = sld [smem:[#allocation7_spill]] }
 0xa1e   : > { %p26_p5 = scmp.ge.s32.totalorder %s29_s26, 4   ;;  %s2386_s23 = sld [smem:[#allocation12_spill]] }
 0xa1f   : > { %s2387_s24 = sld [smem:[#allocation8_spill]]  ;;  %s2388_s25 = sld [smem:[#allocation10_spill]] }
 0xa20   : > { %s2389_s21 = smov %s1935_s22  ;;  %28 = sbr.rel (!%p26_p5) target bundleno = 9 (0x9), region = 126 }
 0xa23   : > { %s2390_s22 = smov %s2385_s30 }
 0xa27   :  { %1515 = vsyncpa [#allocation4], 1 }
 0xa28   :  { %1517 = vsyncpa [#allocation4 + $0x1], 1 }

</bundles_post_ra>
